<compile_context>
chip_gen: v6e
topology: v6e:2x2x1
jax: 0.10.0
libtpu: 0.0.40
codegen_flags: <defaults>
</compile_context>

<pallas_src>
import jax
import jax.numpy as jnp
from jax.experimental import pallas as pl
from jax.experimental.pallas import tpu as pltpu

D_IN = 96
D_HID = 256
D_OUT = 96
D_OUT_PAD = 128  # lane-dense padding of the 96-wide output features


def _round_up(x, m):
    return ((x + m - 1) // m) * m


def mlp_kernel(x_ref, w1_ref, b1_ref, w2_ref, b2_ref, w3_ref, b3_ref, o_ref):
    # x_ref: [TB, 96] f32 ; weights bf16 ; biases f32 ; o_ref: [TB, 128].
    x = x_ref[...].astype(jnp.bfloat16)  # in-kernel cast (no extra HBM pass)
    h1 = jnp.dot(x, w1_ref[...], preferred_element_type=jnp.float32) + b1_ref[...]
    h1 = jnp.maximum(h1, 0.0).astype(jnp.bfloat16)
    h2 = jnp.dot(h1, w2_ref[...], preferred_element_type=jnp.float32) + b2_ref[...]
    h2 = jnp.maximum(h2, 0.0).astype(jnp.bfloat16)
    y = jnp.dot(h2, w3_ref[...], preferred_element_type=jnp.float32) + b3_ref[...]
    o_ref[...] = y.astype(o_ref.dtype)


def prepare_params(params):
    """Cast weights to bf16 and pad the output-side feature dim 96 -> 128. Do once.

    Padded W3/b3 columns are exact zeros, so output lanes 96..127 are exact zeros.
    """
    w1 = params["w1"].astype(jnp.bfloat16)                                   # [96, 256]
    w2 = params["w2"].astype(jnp.bfloat16)                                   # [256, 256]
    w3 = jnp.pad(params["w3"], ((0, 0), (0, D_OUT_PAD - D_OUT))).astype(jnp.bfloat16)
    b1 = params["b1"].astype(jnp.float32)
    b2 = params["b2"].astype(jnp.float32)
    b3 = jnp.pad(params["b3"], ((0, 0), (0, D_OUT_PAD - D_OUT))).astype(jnp.float32)
    return {"w1": w1, "b1": b1, "w2": w2, "b2": b2, "w3": w3, "b3": b3}


def generator_forward(x, prepared, tile_b=1024, out_dtype=jnp.float32):
    """x: [B, 96] float32. prepared: output of prepare_params().

    Returns [B, 96] in out_dtype (f32 by default; pass bf16 to halve writeback
    bytes on HBM-bound chips if downstream tolerates it).
    """
    B = x.shape[0]

    # Batch tile: multiple of 8 (sublane), capped at tile_b.
    tb = _round_up(min(tile_b, _round_up(B, 8)), 8)
    # v7x megacore: make sure the parallel grid axis has >= 2 steps when the
    # batch permits, so both TensorCores get work (no-op cost on v5e/v6e).
    if B > 8 and tb >= _round_up(B, 8):
        tb = max(8, _round_up(_round_up(B, 8) // 2, 8))
    b_pad = _round_up(B, tb)

    # Only the batch axis may need padding now (cheap / usually skipped);
    # feature pad+cast happens inside the kernel for free.
    x_p = x if b_pad == B else jnp.pad(x, ((0, b_pad - B), (0, 0)))

    const = lambda shape: pl.BlockSpec(shape, lambda i: (0, 0))

    flops = 2 * b_pad * (D_IN * D_HID + D_HID * D_HID + D_HID * D_OUT_PAD)
    bytes_accessed = (
        b_pad * D_IN * 4                                   # x read (f32)
        + b_pad * D_OUT_PAD * jnp.dtype(out_dtype).itemsize  # out write
        + (D_IN * D_HID + D_HID * D_HID + D_HID * D_OUT_PAD) * 2  # bf16 weights
        + (2 * D_HID + D_OUT_PAD) * 4                      # f32 biases
    )

    out = pl.pallas_call(
        mlp_kernel,
        out_shape=jax.ShapeDtypeStruct((b_pad, D_OUT_PAD), out_dtype),
        grid_spec=pltpu.PrefetchScalarGridSpec(
            num_scalar_prefetch=0,
            grid=(b_pad // tb,),
            in_specs=[
                pl.BlockSpec((tb, D_IN), lambda i: (i, 0)),   # x tile (f32, 96 = full dim)
                const((D_IN, D_HID)),   const((1, D_HID)),    # layer 1
                const((D_HID, D_HID)),  const((1, D_HID)),    # layer 2
                const((D_HID, D_OUT_PAD)), const((1, D_OUT_PAD)),  # layer 3
            ],
            out_specs=pl.BlockSpec((tb, D_OUT_PAD), lambda i: (i, 0)),
        ),
        compiler_params=pltpu.CompilerParams(
            dimension_semantics=("parallel",),
            vmem_limit_bytes=32 * 1024 * 1024,  # covers large tiles on v5e's 16 MiB default
        ),
        cost_estimate=pl.CostEstimate(
            flops=flops, transcendentals=0, bytes_accessed=bytes_accessed
        ),
    )(
        x_p,
        prepared["w1"], prepared["b1"],
        prepared["w2"], prepared["b2"],
        prepared["w3"], prepared["b3"],
    )
    # Module semantics: [B, 96]. (Callers that accept the padded [b_pad, 128]
    # slab can skip this slice to avoid an extra XLA copy pass.)
    return out[:B, :D_OUT]


def init_params(key):
    """Deterministic init mimicking nn.Linear default (uniform(-1/sqrt(fan_in), ...))."""
    ks = jax.random.split(key, 6)

    def lin(kw, kb, fan_in, fan_out):
        bound = 1.0 / jnp.sqrt(fan_in)
        # stored transposed: [in, out]
        w = jax.random.uniform(kw, (fan_in, fan_out), jnp.float32, -bound, bound)
        b = jax.random.uniform(kb, (1, fan_out), jnp.float32, -bound, bound)
        return w, b

    w1, b1 = lin(ks[0], ks[1], D_IN, D_HID)
    w2, b2 = lin(ks[2], ks[3], D_HID, D_HID)
    w3, b3 = lin(ks[4], ks[5], D_HID, D_OUT)
    return {"w1": w1, "b1": b1, "w2": w2, "b2": b2, "w3": w3, "b3": b3}


def reference_forward(x, p):
    """Pure-JAX reference matching the kernel's numerics (bf16 matmul inputs, f32 acc)."""
    f = jnp.float32
    xb = x.astype(jnp.bfloat16)
    w1 = p["w1"].astype(jnp.bfloat16)
    w2 = p["w2"].astype(jnp.bfloat16)
    w3 = p["w3"].astype(jnp.bfloat16)
    h1 = jnp.maximum(jnp.dot(xb, w1, preferred_element_type=f) + p["b1"], 0.0)
    h2 = jnp.maximum(jnp.dot(h1.astype(jnp.bfloat16), w2, preferred_element_type=f) + p["b2"], 0.0)
    return jnp.dot(h2.astype(jnp.bfloat16), w3, preferred_element_type=f) + p["b3"]


if __name__ == "__main__":
    key = jax.random.PRNGKey(0)
    k_params, k_x = jax.random.split(key)

    params = init_params(k_params)
    prepared = prepare_params(params)

    batch = 16  # small; exercises the >=2-step grid (megacore) path
    x = jax.random.normal(k_x, (batch, D_IN), jnp.float32)

    out = generator_forward(x, prepared)
    out = jax.block_until_ready(out)

    ref = reference_forward(x, params)
    assert out.shape == (batch, D_OUT), out.shape
    assert jnp.allclose(out, ref, atol=2e-2, rtol=2e-2), "mismatch vs reference"

    print("KERNEL_OK")
</pallas_src>

<mosaic_0001>
module attributes {stable_mosaic.version = 11 : i64} {
  func.func @mlp_kernel(%arg0: i32, %arg1: memref<8x96xf32, #tpu.memory_space<vmem>>, %arg2: memref<96x256xbf16, #tpu.memory_space<vmem>>, %arg3: memref<1x256xf32, #tpu.memory_space<vmem>>, %arg4: memref<256x256xbf16, #tpu.memory_space<vmem>>, %arg5: memref<1x256xf32, #tpu.memory_space<vmem>>, %arg6: memref<256x128xbf16, #tpu.memory_space<vmem>>, %arg7: memref<1x128xf32, #tpu.memory_space<vmem>>, %arg8: memref<8x128xf32, #tpu.memory_space<vmem>>) attributes {dimension_semantics = [#tpu.dimension_semantics<parallel>], iteration_bounds = array<i64: 2>, scalar_prefetch = 0 : i64, scratch_operands = 0 : i64, tpu.core_type = #tpu.core_type<tc>, window_params = [{transform_indices = @transform_0, window_bounds = array<i64: 8, 96>}, {pipeline_mode = #tpu.pipeline_mode<synchronous>, transform_indices = @transform_1, window_bounds = array<i64: 96, 256>}, {pipeline_mode = #tpu.pipeline_mode<synchronous>, transform_indices = @transform_2, window_bounds = array<i64: 1, 256>}, {pipeline_mode = #tpu.pipeline_mode<synchronous>, transform_indices = @transform_3, window_bounds = array<i64: 256, 256>}, {pipeline_mode = #tpu.pipeline_mode<synchronous>, transform_indices = @transform_4, window_bounds = array<i64: 1, 256>}, {pipeline_mode = #tpu.pipeline_mode<synchronous>, transform_indices = @transform_5, window_bounds = array<i64: 256, 128>}, {pipeline_mode = #tpu.pipeline_mode<synchronous>, transform_indices = @transform_6, window_bounds = array<i64: 1, 128>}, {transform_indices = @transform_7, window_bounds = array<i64: 8, 128>}]} {
    %c0 = arith.constant 0 : index
    %c0_0 = arith.constant 0 : index
    %0 = vector.load %arg1[%c0, %c0_0] : memref<8x96xf32, #tpu.memory_space<vmem>>, vector<8x96xf32>
    %1 = arith.truncf %0 : vector<8x96xf32> to vector<8x96xbf16>
    %c0_1 = arith.constant 0 : index
    %c0_2 = arith.constant 0 : index
    %2 = vector.load %arg2[%c0_1, %c0_2] : memref<96x256xbf16, #tpu.memory_space<vmem>>, vector<96x256xbf16>
    %cst = arith.constant dense<0.000000e+00> : vector<8x256xf32>
    %3 = tpu.matmul %1, %2, %cst {dimension_numbers = #tpu.dot_dimension_numbers<[1], [0], [0], [1], [0, 0, 1, 1], [], []>} : vector<8x96xbf16>, vector<96x256xbf16>, vector<8x256xf32> -> vector<8x256xf32>
    %c0_3 = arith.constant 0 : index
    %c0_4 = arith.constant 0 : index
    %4 = vector.load %arg3[%c0_3, %c0_4] : memref<1x256xf32, #tpu.memory_space<vmem>>, vector<1x256xf32>
    %5 = vector.broadcast %4 : vector<1x256xf32> to vector<8x256xf32>
    %6 = arith.addf %3, %5 : vector<8x256xf32>
    %cst_5 = arith.constant 0.000000e+00 : f32
    %7 = vector.broadcast %cst_5 : f32 to vector<8x256xf32>
    %8 = arith.maximumf %6, %7 : vector<8x256xf32>
    %9 = arith.truncf %8 : vector<8x256xf32> to vector<8x256xbf16>
    %c0_6 = arith.constant 0 : index
    %c0_7 = arith.constant 0 : index
    %10 = vector.load %arg4[%c0_6, %c0_7] : memref<256x256xbf16, #tpu.memory_space<vmem>>, vector<256x256xbf16>
    %cst_8 = arith.constant dense<0.000000e+00> : vector<8x256xf32>
    %11 = tpu.matmul %9, %10, %cst_8 {dimension_numbers = #tpu.dot_dimension_numbers<[1], [0], [0], [1], [0, 0, 1, 1], [], []>} : vector<8x256xbf16>, vector<256x256xbf16>, vector<8x256xf32> -> vector<8x256xf32>
    %c0_9 = arith.constant 0 : index
    %c0_10 = arith.constant 0 : index
    %12 = vector.load %arg5[%c0_9, %c0_10] : memref<1x256xf32, #tpu.memory_space<vmem>>, vector<1x256xf32>
    %13 = vector.broadcast %12 : vector<1x256xf32> to vector<8x256xf32>
    %14 = arith.addf %11, %13 : vector<8x256xf32>
    %cst_11 = arith.constant 0.000000e+00 : f32
    %15 = vector.broadcast %cst_11 : f32 to vector<8x256xf32>
    %16 = arith.maximumf %14, %15 : vector<8x256xf32>
    %17 = arith.truncf %16 : vector<8x256xf32> to vector<8x256xbf16>
    %c0_12 = arith.constant 0 : index
    %c0_13 = arith.constant 0 : index
    %18 = vector.load %arg6[%c0_12, %c0_13] : memref<256x128xbf16, #tpu.memory_space<vmem>>, vector<256x128xbf16>
    %cst_14 = arith.constant dense<0.000000e+00> : vector<8x128xf32>
    %19 = tpu.matmul %17, %18, %cst_14 {dimension_numbers = #tpu.dot_dimension_numbers<[1], [0], [0], [1], [0, 0, 1, 1], [], []>} : vector<8x256xbf16>, vector<256x128xbf16>, vector<8x128xf32> -> vector<8x128xf32>
    %c0_15 = arith.constant 0 : index
    %c0_16 = arith.constant 0 : index
    %20 = vector.load %arg7[%c0_15, %c0_16] : memref<1x128xf32, #tpu.memory_space<vmem>>, vector<1x128xf32>
    %21 = vector.broadcast %20 : vector<1x128xf32> to vector<8x128xf32>
    %22 = arith.addf %19, %21 : vector<8x128xf32>
    %c0_17 = arith.constant 0 : index
    %c0_18 = arith.constant 0 : index
    %23 = vector.load %arg8[%c0_17, %c0_18] : memref<8x128xf32, #tpu.memory_space<vmem>>, vector<8x128xf32>
    tpu.vector_store %arg8[%c0_17, %c0_18], %22 {strides = array<i32>} : memref<8x128xf32, #tpu.memory_space<vmem>>, vector<8x128xf32>,
    return
  }
  func.func @transform_0(%arg0: i32) -> (i32, i32) {
    %c0_i32 = arith.constant 0 : i32
    %c0_i32_0 = arith.constant 0 : i32
    return %arg0, %c0_i32 : i32, i32
  }
  func.func @transform_1(%arg0: i32) -> (i32, i32) {
    %c0_i32 = arith.constant 0 : i32
    %c0_i32_0 = arith.constant 0 : i32
    %c0_i32_1 = arith.constant 0 : i32
    return %c0_i32, %c0_i32_0 : i32, i32
  }
  func.func @transform_2(%arg0: i32) -> (i32, i32) {
    %c0_i32 = arith.constant 0 : i32
    %c0_i32_0 = arith.constant 0 : i32
    %c0_i32_1 = arith.constant 0 : i32
    return %c0_i32, %c0_i32_0 : i32, i32
  }
  func.func @transform_3(%arg0: i32) -> (i32, i32) {
    %c0_i32 = arith.constant 0 : i32
    %c0_i32_0 = arith.constant 0 : i32
    %c0_i32_1 = arith.constant 0 : i32
    return %c0_i32, %c0_i32_0 : i32, i32
  }
  func.func @transform_4(%arg0: i32) -> (i32, i32) {
    %c0_i32 = arith.constant 0 : i32
    %c0_i32_0 = arith.constant 0 : i32
    %c0_i32_1 = arith.constant 0 : i32
    return %c0_i32, %c0_i32_0 : i32, i32
  }
  func.func @transform_5(%arg0: i32) -> (i32, i32) {
    %c0_i32 = arith.constant 0 : i32
    %c0_i32_0 = arith.constant 0 : i32
    %c0_i32_1 = arith.constant 0 : i32
    return %c0_i32, %c0_i32_0 : i32, i32
  }
  func.func @transform_6(%arg0: i32) -> (i32, i32) {
    %c0_i32 = arith.constant 0 : i32
    %c0_i32_0 = arith.constant 0 : i32
    %c0_i32_1 = arith.constant 0 : i32
    return %c0_i32, %c0_i32_0 : i32, i32
  }
  func.func @transform_7(%arg0: i32) -> (i32, i32) {
    %c0_i32 = arith.constant 0 : i32
    %c0_i32_0 = arith.constant 0 : i32
    return %arg0, %c0_i32 : i32, i32
  }
}

</mosaic_0001>

<bundles_post_ra>
// kernel: tpu_custom_call.1
= control target key start
LH: loop header
LB: loop body
LE: loop exit
PB: predicated region body
PF: predicated region fallthrough
CT: control target
= control target key end

     0   :  { %s1707_s0 = inlined_call_operand.hbm [shape: f32[16,96], index: 0, kind: input, shape index: {}]   ;;  %s1708_s1 = inlined_call_operand.hbm [shape: bf16[96,256], index: 1, kind: input, shape index: {}]   ;;  %s1709_s2 = inlined_call_operand.vmem [shape: f32[1,256], index: 2, kind: input, shape index: {}]   ;;  %s1710_s3 = inlined_call_operand.hbm [shape: bf16[256,256], index: 3, kind: input, shape index: {}]   ;;  %s1711_s4 = inlined_call_operand.vmem [shape: f32[1,256], index: 4, kind: input, shape index: {}]   ;;  %s1712_s5 = inlined_call_operand.hbm [shape: bf16[256,128], index: 5, kind: input, shape index: {}]   ;;  %s1713_s6 = inlined_call_operand.vmem [shape: f32[1,128], index: 6, kind: input, shape index: {}]   ;;  %s1714_s7 = inlined_call_operand.hbm [shape: f32[16,128], index: 7, kind: output, shape index: {}]  }
   0x1   :  { %1719 = sst [smem:[#allocation15_spill]] %s1708_s1 }
   0x2   :  { %1720 = sst [smem:[#allocation16_spill]] %s1710_s3 }
   0x3   :  { %12 = vsyncpa [#allocation3], 0 }
   0x4   :  { %14 = vsyncpa [#allocation3 + $0x1], 0 }
   0x5   :  { %15 = vsyncpa [#allocation6], 0 }
   0x6   :  { %16 = vsyncpa [#allocation9], 0 }
   0x7   :  { %17 = vsyncpa [#allocation4], 0 }
   0x8   :  { %19 = vsyncpa [#allocation4 + $0x1], 0  ;;  %s1508_s24 = smov 0   ;;  %s1510_s25 = smov 0  }
   0x9   :  { %s1512_s26 = smov 0   ;;  %s1514_s27 = smov 0  }
   0xa LB: > { %s1529_s28 = sadd.s32 4294967295, %s1456_s27   ;;  %s1012_s29 = sadd.s32 4294967294, %s1456_s27   ;;  %s1456_s27 = sphi %s1514_s27, %s1742_s27   ;;  %s1452_s26 = sphi %s1512_s26, %s1741_s26   ;;  %s1448_s25 = sphi %s1510_s25, %s1740_s25   ;;  %s1444_s24 = sphi %s1508_s24, %s1739_s24  }
   0xb   : > { %p45_p0 = scmp.ne.s32.totalorder %s1448_s25, %s1444_s24  ;;  %p1715_p1 = scmp.eq.s32.totalorder %s1529_s28, 0 }
   0xc   : > { %p201_p3 = scmp.eq.s32.totalorder %s1012_s29, 1  ;;  %p1013_p5 = scmp.ge.s32.totalorder %s1456_s27, 1 }
   0xd   : > { %p1538_p4 = por %p1715_p1, %p45_p0  ;;  %p208_p7 = scmp.lt.s32.totalorder %s1456_s27, 3 }
   0xe   : > { %p1543_p6 = por %p201_p3, %p45_p0  ;;  %s1458_s10 = smov [#allocation5]  }
   0xf   : > { %s1721_s30 = scalar_select %p1538_p4, 1, 0 }
  0x10   : > { %s1722_s8 = scalar_select %p1543_p6, 1, 0 }
  0x11   : > { %p1548_p8 = pnand %p1013_p5, %p208_p7  ;;  %s220_s11 = sshll.u32 %s1458_s10, 4  ;;  %s221_s11 = int_to_ptr.vmem [resolvable:$true] %s220_s11 }
  0x12   : > { %s1459_s13 = smov [#allocation7]   ;;  %s1460_s15 = smov [#allocation8]  }
  0x13   : > { %s1723_s9 = scalar_select %p1548_p8, 1, 0 }
  0x14   : > { %p1130_p9 = pneg %p1548_p8  ;;  %s236_s14 = sshll.u32 %s1459_s13, 4  ;;  %s237_s14 = int_to_ptr.vmem [resolvable:$true] %s236_s14 }
  0x15   : > { %s252_s16 = sshll.u32 %s1460_s15, 4  ;;  %s1289_s17 = scalar_lea.vmem %s221_s11, 1536  ;;  %s253_s16 = int_to_ptr.vmem [resolvable:$true] %s252_s16 }
  0x16   : > { %p1557_p11 = pnand %p1130_p9, %p1715_p1  ;;  %p1290_p13 = scmp.ne.s32.totalorder %s221_s11, %s1289_s17 }
  0x17   : > { %p1297_p5 = scmp.lt.s32.totalorder %s221_s11, %s221_s11  ;;  %p1298_p7 = scmp.lt.s32.totalorder %s1289_s17, %s1289_s17 }
  0x18   : > { %p1280_p12 = pneg %p1557_p11 }
  0x19   : > { %p1299_p9 = por %p1298_p7, %p1297_p5 }
  0x1a   : > { %p1292_p0 = pnand %p1290_p13, %p1280_p12 }
  0x1c   : > { %p1293_p3 = pneg %p1292_p0 }
  0x1e   : > { %p1300_p10 = pnand %p1299_p9, %p1293_p3 }
  0x20   : > { %1303 = shalt.err (!%p1300_p10)
}
  0x21   : > { %s1461_s18 = smov 128   ;;  %s1462_s19 = smov 8  }
  0x22   : > { %s1725_s1 = sld [smem:[#allocation15_spill]]  ;;  %s1315_s22 = scalar_lea.vmem %s237_s14, 4096 }
  0x23   : > { %p1316_p1 = scmp.ne.s32.totalorder %s237_s14, %s1315_s22  ;;  %p1323_p2 = scmp.lt.s32.totalorder %s237_s14, %s237_s14 }
  0x24   : > { %p1324_p6 = scmp.lt.s32.totalorder %s1315_s22, %s1315_s22 }
  0x25   : > { %p1318_p13 = pnand %p1316_p1, %p1280_p12 }
  0x26   : > { %p1325_p5 = por %p1324_p6, %p1323_p2 }
  0x27   : > { %p1319_p0 = pneg %p1318_p13 }
  0x28   : > { %1133 = dma.hbm_to_vmem [thread:$0]  (!%p1557_p11), %s1725_s1, 1536, %s221_s11, [#allocation6], %s1461_s18, %s1461_s18, %s1462_s19  }
  0x29   : > { %p1326_p3 = pnand %p1325_p5, %p1319_p0 }
  0x2b   : > { %1329 = shalt.err (!%p1326_p3)
}
  0x2c   : > { %s1726_s3 = sld [smem:[#allocation16_spill]]  ;;  %s1341_s10 = scalar_lea.vmem %s253_s16, 2048 }
  0x2d   : > { %p1342_p10 = scmp.ne.s32.totalorder %s253_s16, %s1341_s10  ;;  %p1349_p9 = scmp.lt.s32.totalorder %s253_s16, %s253_s16 }
  0x2e   : > { %p1350_p13 = scmp.lt.s32.totalorder %s1341_s10, %s1341_s10 }
  0x2f   : > { %p1344_p7 = pnand %p1342_p10, %p1280_p12 }
  0x30   : > { %p1351_p4 = por %p1350_p13, %p1349_p9 }
  0x31   : > { %p1345_p1 = pneg %p1344_p7 }
  0x32   : > { %1136 = dma.hbm_to_vmem [thread:$0]  (!%p1557_p11), %s1726_s3, 4096, %s237_s14, [#allocation6], %s1461_s18, %s1461_s18, %s1462_s19  }
  0x33   : > { %p1352_p2 = pnand %p1351_p4, %p1345_p1 }
  0x35   : > { %1355 = shalt.err (!%p1352_p2)
}
  0x36   : > { %s1463_s11 = smov 64   ;;  %s1464_s13 = smov 4  }
  0x37   : > { %1139 = dma.hbm_to_vmem [thread:$0]  (!%p1557_p11), %s1712_s5, 2048, %s253_s16, [#allocation9], %s1463_s11, %s1463_s11, %s1464_s13  }
  0x38   : > { %s1588_s17 = sadd.s32 1, %s1456_s27   ;;  %s32_s19 = sadd.s32 1, %s1452_s26 }
  0x39   : > { %s29_s18 = ssub.s32 %s1456_s27, %s1588_s17  ;;  %p39_p6 = scmp.ne.s32.totalorder %s1452_s26, %s1448_s25 }
  0x3a   : > { %p30_p4 = scmp.eq.s32.totalorder %s29_s18, 0  ;;  %p40_p12 = scmp.eq.s32.totalorder %s1456_s27, 0 }
  0x3b   : > { %p1151_p0 = scmp.lt.s32.totalorder %s1456_s27, 2  ;;  %p1727_p3 = scmp.eq.s32.totalorder %s1529_s28, 1 }
  0x3c   : > { %s1598_s20 = scalar_select %p30_p4, %s1452_s26, %s32_s19  }
  0x3d   : > { %p41_p5 = por %p40_p12, %p39_p6  ;;  %p1602_p10 = por %p1727_p3, %p39_p6 }
  0x3e   : > { %s269_s12 = sand.u32 1, %s1452_s26   ;;  %s1019_s22 = sshll.u32 %s1456_s27, 7 }
  0x3f   : > { %s1728_s21 = scalar_select %p1602_p10, 1, 0 }
  0x40   : > { %s1018_s16 = sshll.u32 %s269_s12, 3  ;;  %s1611_s10 = scalar_lea.hbm %s1707_s0, %s1019_s22 }
  0x41   : > { %s273_s11 = scalar_lea.vmem [#allocation2], %s1018_s16  ;;  %p1613_p11 = pnand %p1151_p0, %p41_p5 }
  0x42   : > { %s280_s13 = sshll.u32 %s273_s11, 4  ;;  %s270_s15 = scalar_lea.sflag [#allocation3], %s269_s12  ;;  %s281_s13 = int_to_ptr.vmem [resolvable:$true] %s280_s13 }
  0x43   : > { %s1356_s18 = scalar_lea.hbm %s1611_s10, 128  ;;  %p1358_p1 = pneg %p1613_p11 }
  0x44   : > { %p1357_p7 = scmp.ne.s32.totalorder %s1611_s10, %s1356_s18  ;;  %s1361_s23 = scalar_lea.hbm %s1707_s0, 256 }
  0x45   : > { %p1362_p2 = scmp.lt.s32.totalorder %s1611_s10, %s1707_s0  ;;  %p1363_p4 = scmp.lt.s32.totalorder %s1361_s23, %s1356_s18 }
  0x46   : > { %p1359_p9 = pnand %p1358_p1, %p1357_p7 }
  0x47   : > { %p1364_p6 = por %p1363_p4, %p1362_p2 }
  0x48   : > { %p1360_p13 = pneg %p1359_p9 }
  0x4a   : > { %p1365_p12 = pnand %p1364_p6, %p1360_p13 }
  0x4c   : > { %1368 = shalt.err (!%p1365_p12)
}
  0x4d   : > { %s1369_s11 = scalar_lea.vmem %s281_s13, 128  ;;  %s1465_s12 = smov [#allocation2]  }
  0x4e   : > { %p1370_p0 = scmp.ne.s32.totalorder %s281_s13, %s1369_s11  ;;  %s1374_s1 = sshll.u32 %s1465_s12, 4  ;;  %s1375_s1 = int_to_ptr.vmem [resolvable:$false] %s1374_s1 }
  0x4f   : > { %s1376_s3 = scalar_lea.vmem %s1375_s1, 256  ;;  %p1377_p7 = scmp.lt.s32.totalorder %s281_s13, %s1375_s1 }
  0x50   : > { %p1372_p5 = pnand %p1370_p0, %p1358_p1  ;;  %p1378_p9 = scmp.lt.s32.totalorder %s1376_s3, %s1369_s11 }
  0x52   : > { %p1373_p3 = pneg %p1372_p5  ;;  %p1379_p10 = por %p1378_p9, %p1377_p7 }
  0x54   : > { %p1380_p8 = pnand %p1379_p10, %p1373_p3 }
  0x56   : > { %1383 = shalt.err (!%p1380_p8)
}
  0x57   : > { %1143 = dma.hbm_to_vmem [thread:$0]  (!%p1613_p11), %s1611_s10, 128, %s281_s13, %s270_s15  }
  0x58   : > { %p1730_p13 = scmp.ne.s32.totalorder %s1723_s9, 0 }
  0x59   : > { %s1634_s18 = sand.u32 (!%p1730_p13), 1, %s1448_s25   ;;  %p1731_p8 = scmp.ne.s32.totalorder (!%p1730_p13), %s1721_s30, 0 }
  0x5a   : > { %289 = sbr.rel (%p1730_p13) target bundleno = 743 (0x2e7), region = 48  ;;  %s1021_s19 = sshll.u32 (!%p1730_p13), %s1634_s18, 3 }
  0x5b   : > { %s292_s1 = scalar_lea.sflag (!%p1730_p13), [#allocation3], %s1634_s18  ;;  %s1640_s3 = scalar_lea.vmem (!%p1730_p13), [#allocation2], %s1021_s19 }
  0x5f   : > { %1427 = dma.done.wait (%p1731_p8), %s292_s1, 128  }
  0x60   : > { %1429 = vsyncadd (%p1731_p8), %s292_s1, 4294967168  ;;  %p1732_p10 = scmp.eq.s32.totalorder %s1529_s28, 0 }
  0x62   : > { %1431 = dma.done.wait (%p1732_p10), [#allocation6], 5632   ;;  %p1733_p11 = pmov %p1732_p10 }
  0x63   : > { %p1734_p1 = pmov %p1732_p10 }
  0x64   : > { %1433 = vsyncadd (%p1733_p11), [#allocation6], 4294961664 }
  0x65   : > { %1435 = dma.done.wait (%p1734_p1), [#allocation9], 2048   ;;  %p1735_p2 = pmov %p1734_p1 }
  0x66   : > { %v1466_v0 = vmov 0   ;;  %v1196_v1 = vld [vmem:[#allocation5 + $0x54] ss:$8 sps:$4 sm:$0xff]   ;;  %v1198_v2 = vld [vmem:[#allocation5 + $0x50] ss:$8 sps:$4 sm:$0xff]   ;;  %vm425_vm0 = vcmask 785408   ;;  %v355_v59 = vlaneseq }
  0x67   : > { %1437 = vsyncadd (%p1735_p2), [#allocation9], 4294965248  ;;  %461 = vmatprep.mubr.bf16.mxu0 %v1466_v0  ;;  %433 = vmatprep.subr.bf16.mxu0 %v1196_v1  ;;  %v1199_v3 = vld [vmem:[#allocation5 + $0x44] ss:$8 sps:$4 sm:$0xff]   ;;  %v1201_v4 = vld [vmem:[#allocation5 + $0x40] ss:$8 sps:$4 sm:$0xff]  }
  0x68   : > { %434 = vmatpush1.bf16.msra.mxu0 %v1198_v2  ;;  %v1202_v5 = vld [vmem:[#allocation5 + $0x34] ss:$8 sps:$4 sm:$0xff]   ;;  %v1204_v6 = vld [vmem:[#allocation5 + $0x30] ss:$8 sps:$4 sm:$0xff]   ;;  %v1205_v7 = vld [vmem:[#allocation5 + $0x24] ss:$8 sps:$4 sm:$0xff]  }
  0x69   : > { %435 = vmatprep.subr.bf16.mxu0 %v1199_v3  ;;  %v1214_v8 = vld [vmem:[#allocation7 + $0x74] ss:$8 sps:$4 sm:$0xff]   ;;  %v1216_v9 = vld [vmem:[#allocation7 + $0x70] ss:$8 sps:$4 sm:$0xff]   ;;  %v1207_v10 = vld [vmem:[#allocation5 + $0x20] ss:$8 sps:$4 sm:$0xff]  }
  0x6a   : > { %v1217_v11 = vld [vmem:[#allocation7 + $0x64] ss:$8 sps:$4 sm:$0xff]   ;;  %v1208_v12 = vld [vmem:[#allocation5 + $0x14] ss:$8 sps:$4 sm:$0xff]   ;;  %678 = vmatprep.subr.bf16.mxu1 %v1214_v8  ;;  %v1219_v13 = vld [vmem:[#allocation7 + $0x60] ss:$8 sps:$4 sm:$0xff]  }
  0x6b   : > { %679 = vmatpush1.bf16.msra.mxu1 %v1216_v9  ;;  %v1220_v14 = vld [vmem:[#allocation7 + $0x54] ss:$8 sps:$4 sm:$0xff]   ;;  %v1210_v15 = vld [vmem:[#allocation5 + $0x10] ss:$8 sps:$4 sm:$0xff]   ;;  %v1211_v16 = vld [vmem:[#allocation5 + $0x4] ss:$8 sps:$4 sm:$0xff]  }
  0x6c   : > { %436 = vmatpush1.bf16.msra.mxu0 %v1201_v4  ;;  %680 = vmatprep.subr.bf16.mxu1 %v1217_v11  ;;  %v1222_v17 = vld [vmem:[#allocation7 + $0x50] ss:$8 sps:$4 sm:$0xff]   ;;  %v1223_v18 = vld [vmem:[#allocation7 + $0x44] ss:$8 sps:$4 sm:$0xff]   ;;  %v1213_v19 = vld [vmem:[#allocation5] ss:$8 sps:$4 sm:$0xff]  }
  0x6d   : > { %437 = vmatprep.subr.bf16.mxu0 %v1202_v5  ;;  %v339_v20 = vld [vmem:[%s1640_s3] sm:$0xff]  ;;  %v1225_v21 = vld [vmem:[#allocation7 + $0x40] ss:$8 sps:$4 sm:$0xff]   ;;  %v1229_v25 = vld [vmem:[#allocation7 + $0x24] ss:$8 sps:$4 sm:$0xff]   ;;  %v356_v60 = vshrl.u32 %v355_v59, 7 }
  0x6e   : > { %v1226_v22 = vld [vmem:[#allocation7 + $0x34] ss:$8 sps:$4 sm:$0xff]   ;;  %v340_v23 = vpack.c.bf16 %v339_v20, %v339_v20  ;;  %v1228_v24 = vld [vmem:[#allocation7 + $0x30] ss:$8 sps:$4 sm:$0xff]   ;;  %v1231_v26 = vld [vmem:[#allocation7 + $0x20] ss:$8 sps:$4 sm:$0xff]  }
  0x6f   : > { %681 = vmatpush1.bf16.msra.mxu1 %v1219_v13  ;;  %v1232_v27 = vld [vmem:[#allocation7 + $0x14] ss:$8 sps:$4 sm:$0xff]   ;;  %v1234_v28 = vld [vmem:[#allocation7 + $0x10] ss:$8 sps:$4 sm:$0xff]   ;;  %v1235_v29 = vld [vmem:[#allocation7 + $0x4] ss:$8 sps:$4 sm:$0xff]  }
  0x70   : > { %438 = vmatpush1.bf16.msra.mxu0 %v1204_v6  ;;  %682 = vmatprep.subr.bf16.mxu1 %v1220_v14  ;;  %v1237_v30 = vld [vmem:[#allocation7] ss:$8 sps:$4 sm:$0xff]   ;;  %v1238_v31 = vld [vmem:[#allocation7 + $0xf4] ss:$8 sps:$4 sm:$0xff]   ;;  %v1240_v32 = vld [vmem:[#allocation7 + $0xf0] ss:$8 sps:$4 sm:$0xff]  }
  0x71   : > { %439 = vmatprep.subr.bf16.mxu0 %v1205_v7  ;;  %v1241_v33 = vld [vmem:[#allocation7 + $0xe4] ss:$8 sps:$4 sm:$0xff]   ;;  %v1243_v34 = vld [vmem:[#allocation7 + $0xe0] ss:$8 sps:$4 sm:$0xff]   ;;  %v1244_v35 = vld [vmem:[#allocation7 + $0xd4] ss:$8 sps:$4 sm:$0xff]  }
  0x72   : > { %v1246_v36 = vld [vmem:[#allocation7 + $0xd0] ss:$8 sps:$4 sm:$0xff]   ;;  %v1247_v37 = vld [vmem:[#allocation7 + $0xc4] ss:$8 sps:$4 sm:$0xff]   ;;  %v1249_v38 = vld [vmem:[#allocation7 + $0xc0] ss:$8 sps:$4 sm:$0xff]  }
  0x73   : > { %683 = vmatpush1.bf16.msra.mxu1 %v1222_v17  ;;  %v1250_v39 = vld [vmem:[#allocation7 + $0xb4] ss:$8 sps:$4 sm:$0xff]   ;;  %v1252_v40 = vld [vmem:[#allocation7 + $0xb0] ss:$8 sps:$4 sm:$0xff]   ;;  %v1253_v41 = vld [vmem:[#allocation7 + $0xa4] ss:$8 sps:$4 sm:$0xff]  }
  0x74   : > { %440 = vmatpush1.bf16.msra.mxu0 %v1207_v10  ;;  %684 = vmatprep.subr.bf16.mxu1 %v1223_v18  ;;  %v1255_v42 = vld [vmem:[#allocation7 + $0xa0] ss:$8 sps:$4 sm:$0xff]   ;;  %v1256_v43 = vld [vmem:[#allocation7 + $0x94] ss:$8 sps:$4 sm:$0xff]   ;;  %v1258_v44 = vld [vmem:[#allocation7 + $0x90] ss:$8 sps:$4 sm:$0xff]  }
  0x75   : > { %441 = vmatprep.subr.bf16.mxu0 %v1208_v12  ;;  %v1259_v45 = vld [vmem:[#allocation7 + $0x84] ss:$8 sps:$4 sm:$0xff]   ;;  %v1261_v46 = vld [vmem:[#allocation7 + $0x80] ss:$8 sps:$4 sm:$0xff]   ;;  %v1262_v47 = vld [vmem:[#allocation8 + $0x78] sm:$0xff]   ;;  %v357_v61 = vsub.s32 0, %v356_v60 }
  0x76   : > { %v1263_v48 = vld [vmem:[#allocation8 + $0x38] sm:$0xff]   ;;  %v1264_v49 = vld [vmem:[#allocation8 + $0x70] sm:$0xff]   ;;  %v1266_v51 = vld [vmem:[#allocation8 + $0x68] sm:$0xff]   ;;  %v361_v63 = vsub.s32 1, %v356_v60  ;;  %s1089_s22 = sshll.u32 %s1529_s28, 7  ;;  %s337_s23 = scalar_lea.vmem [#allocation10], %s1021_s19 }
  0x77   : > { %685 = vmatpush1.bf16.msra.mxu1 %v1225_v21  ;;  %v1265_v50 = vld [vmem:[#allocation8 + $0x30] sm:$0xff]   ;;  %v1267_v52 = vld [vmem:[#allocation8 + $0x28] sm:$0xff]   ;;  %v1268_v53 = vld [vmem:[#allocation8 + $0x60] sm:$0xff]   ;;  %s913_s29 = sshll.u32 %s337_s23, 4  ;;  %s1670_s12 = scalar_lea.hbm %s1714_s7, %s1089_s22  ;;  %s914_s29 = int_to_ptr.vmem [resolvable:$true] %s913_s29 }
  0x78   : > { %442 = vmatpush1.bf16.msra.mxu0 %v1210_v15  ;;  %686 = vmatprep.subr.bf16.mxu1 %v1226_v22  ;;  %v1269_v54 = vld [vmem:[#allocation8 + $0x20] sm:$0xff]   ;;  %v1270_v55 = vld [vmem:[#allocation8 + $0x58] sm:$0xff]   ;;  %v1272_v57 = vld [vmem:[#allocation8 + $0x50] sm:$0xff]   ;;  %s900_s1 = scalar_lea.sflag [#allocation4], %s1634_s18  ;;  %s1384_s3 = scalar_lea.vmem %s914_s29, 128 }
  0x79   : > { %443 = vmatprep.subr.bf16.mxu0 %v1211_v16  ;;  %v1271_v56 = vld [vmem:[#allocation8 + $0x18] sm:$0xff]   ;;  %v1273_v58 = vld [vmem:[#allocation8 + $0x10] sm:$0xff]   ;;  %v1274_v12 = vld [vmem:[#allocation8 + $0x48] sm:$0xff]   ;;  %p1385_p4 = scmp.ne.s32.totalorder %s914_s29, %s1384_s3  ;;  %p1736_p6 = scmp.ne.s32.totalorder %s1728_s21, 0 }
  0x7a   : > { %v353_v62 = vld [vmem:[%s1709_s2] sm:$0x3]  ;;  %v1275_v13 = vld [vmem:[#allocation8 + $0x8] sm:$0xff]   ;;  %v1276_v14 = vld [vmem:[#allocation8 + $0x40] sm:$0xff]   ;;  %s1467_s28 = smov [#allocation10]  }
  0x7b   : > { %687 = vmatpush1.bf16.msra.mxu1 %v1228_v24  ;;  %v358_v0 = vrot.slane %v353_v62, %v357_v61  ;;  %v362_v1 = vrot.slane %v353_v62, %v361_v63  ;;  %v1277_v15 = vld [vmem:[#allocation8] sm:$0xff]   ;;  %v506_v16 = vld [vmem:[%s1711_s4] sm:$0x3]  ;;  %p1386_p12 = pnand %p1385_p4, %p1736_p6  ;;  %s1388_s19 = sshll.u32 %s1467_s28, 4  ;;  %s1389_s19 = int_to_ptr.vmem [resolvable:$false] %s1388_s19 }
  0x7c   : > { %444 = vmatpush1.bf16.msra.mxu0 %v1213_v19  ;;  %688 = vmatprep.subr.bf16.mxu1 %v1229_v25  ;;  %v511_v17 = vrot.slane %v506_v16, %v357_v61  ;;  %v515_v18 = vrot.slane %v506_v16, %v361_v63  ;;  %s1390_s30 = scalar_lea.vmem %s1389_s19, 256  ;;  %p1391_p5 = scmp.lt.s32.totalorder %s914_s29, %s1389_s19 }
  0x7d   : > { %1092 = vmatprep.subr.bf16.mxu0 %v1262_v47  ;;  %p1387_p0 = pneg %p1386_p12  ;;  %p1392_p3 = scmp.lt.s32.totalorder %s1390_s30, %s1384_s3 }
  0x7f   : > { %1038 = vmatmul.mubr.msk.bf16.vlgmr.msra.gmra.mxu0 %vm425_vm0, %v340_v23  ;;  %689 = vmatpush1.bf16.msra.mxu1 %v1231_v26  ;;  %p1393_p7 = por %p1392_p3, %p1391_p5 }
  0x80   : > { %690 = vmatprep.subr.bf16.mxu1 %v1232_v27  ;;  %1093 = vmatpush3.bf16.msra.mxu0 %v1263_v48 }
  0x81   : > { %1094 = vmatprep.subr.bf16.mxu0 %v1264_v49  ;;  %p1394_p9 = pnand %p1393_p7, %p1387_p0 }
  0x83   : > { %691 = vmatpush1.bf16.msra.mxu1 %v1234_v28 }
  0x84   : > { %692 = vmatprep.subr.bf16.mxu1 %v1235_v29  ;;  %1095 = vmatpush3.bf16.msra.mxu0 %v1265_v50 }
  0x85   : > { %1096 = vmatprep.subr.bf16.mxu0 %v1266_v51 }
  0x87   : > { %693 = vmatpush1.bf16.msra.mxu1 %v1237_v30  ;;  %v1071_v30 = vld [vmem:[%s1713_s6] ss:$0 sm:$0xff] }
  0x88   : > { %694 = vmatprep.subr.bf16.mxu1 %v1238_v31  ;;  %1097 = vmatpush3.bf16.msra.mxu0 %v1267_v52 }
  0x89   : > { %1098 = vmatprep.subr.bf16.mxu0 %v1268_v53 }
  0x8b   : > { %695 = vmatpush2.bf16.msra.mxu1 %v1240_v32 }
  0x8c   : > { %696 = vmatprep.subr.bf16.mxu1 %v1241_v33  ;;  %1099 = vmatpush3.bf16.msra.mxu0 %v1269_v54 }
  0x8d   : > { %1100 = vmatprep.subr.bf16.mxu0 %v1270_v55 }
  0x8f   : > { %697 = vmatpush2.bf16.msra.mxu1 %v1243_v34 }
  0x90   : > { %698 = vmatprep.subr.bf16.mxu1 %v1244_v35  ;;  %1101 = vmatpush3.bf16.msra.mxu0 %v1271_v56 }
  0x91   : > { %1102 = vmatprep.subr.bf16.mxu0 %v1272_v57 }
  0x93   : > { %699 = vmatpush2.bf16.msra.mxu1 %v1246_v36 }
  0x94   : > { %700 = vmatprep.subr.bf16.mxu1 %v1247_v37  ;;  %1103 = vmatpush3.bf16.msra.mxu0 %v1273_v58 }
  0x95   : > { %1104 = vmatprep.subr.bf16.mxu0 %v1274_v12 }
  0x97   : > { %701 = vmatpush2.bf16.msra.mxu1 %v1249_v38 }
  0x98   : > { %702 = vmatprep.subr.bf16.mxu1 %v1250_v39  ;;  %1105 = vmatpush3.bf16.msra.mxu0 %v1275_v13 }
  0x99   : > { %1106 = vmatprep.subr.bf16.mxu0 %v1276_v14 }
  0x9b   : > { %703 = vmatpush2.bf16.msra.mxu1 %v1252_v40 }
  0x9c   : > { %704 = vmatprep.subr.bf16.mxu1 %v1253_v41  ;;  %1107 = vmatpush3.bf16.msra.mxu0 %v1277_v15 }
  0x9f   : > { %705 = vmatpush2.bf16.msra.mxu1 %v1255_v42 }
  0xa0   : > { %706 = vmatprep.subr.bf16.mxu1 %v1256_v43 }
  0xa3   : > { %707 = vmatpush2.bf16.msra.mxu1 %v1258_v44 }
  0xa4   : > { %708 = vmatprep.subr.bf16.mxu1 %v1259_v45 }
  0xa7   : > { %709 = vmatpush2.bf16.msra.mxu1 %v1261_v46 }
 0x13f   : > { %v463_v2 = vpop.f32.mrf.mxu0 }
 0x140   : > { %v464_v3 = vadd.f32 %v463_v2, %v358_v0 }
 0x141   : > { %v465_v4 = vpop.f32.mrf.mxu0 }
 0x142   : > { %v466_v5 = vadd.f32 %v465_v4, %v362_v1  ;;  %v470_v6 = vmax.f32 %v464_v3, 0.0 }
 0x143   : > { %v467_v7 = vpop.f32.mrf.mxu0 }
 0x144   : > { %v471_v8 = vmax.f32 %v466_v5, 0.0  ;;  %v472_v11 = vpack.c.bf16 %v470_v6, %v470_v6 }
 0x145   : > { %v468_v9 = vpop.f32.mrf.mxu0 }
 0x146   : > { %v473_v10 = vpack.c.bf16 %v471_v8, %v471_v8 }
 0x148   : > { %710 = vmatprep.mubr.bf16.mxu1 %v473_v10 }
 0x149   : > { %711 = vmatmul.mubr.bf16.vlgmr.msra.gmra.mxu1 %v472_v11 }
 0x209   : > { %v712_v19 = vpop.f32.mrf.mxu1 }
 0x20a   : > { %v713_v20 = vadd.f32 %v712_v19, %v511_v17 }
 0x20b   : > { %v714_v21 = vpop.f32.mrf.mxu1 }
 0x20c   : > { %v715_v22 = vadd.f32 %v714_v21, %v515_v18  ;;  %v719_v23 = vmax.f32 %v713_v20, 0.0 }
 0x20d   : > { %v716_v24 = vpop.f32.mrf.mxu1 }
 0x20e   : > { %v720_v25 = vmax.f32 %v715_v22, 0.0  ;;  %v721_v28 = vpack.c.bf16 %v719_v23, %v719_v23 }
 0x20f   : > { %v717_v26 = vpop.f32.mrf.mxu1 }
 0x210   : > { %v722_v27 = vpack.c.bf16 %v720_v25, %v720_v25 }
 0x212   : > { %890 = vmatprep.mubr.bf16.mxu0 %v722_v27 }
 0x213   : > { %891 = vmatmul.mubr.bf16.vlgmr.msra.gmra.mxu0 %v721_v28 }
 0x2d3   : > { %v1108_v29 = vpop.f32.mrf.mxu0 }
 0x2d5   : > { %v1109_v31 = vpop.f32.mrf.mxu0 }
 0x2d6   : > { %v1110_v32 = vadd.f32 %v1109_v31, %v1108_v29 }
 0x2d7   : > { %v1111_v33 = vpop.f32.mrf.mxu0 }
 0x2d8   : > { %v893_v34 = vadd.f32 %v1110_v32, %v1071_v30 }
 0x2d9   : > { %v1112_v35 = vpop.f32.mrf.mxu0 }
 0x2da   : > { %898 = vst [vmem:[%s337_s23] sm:$0xff] %v893_v34 }
 0x2db   : > { %1397 = shalt.err (!%p1394_p9)
}
 0x2dc   : > { %s1398_s9 = scalar_lea.hbm %s1670_s12, 128  ;;  %s1402_s13 = scalar_lea.hbm %s1714_s7, 256 }
 0x2dd   : > { %p1399_p13 = scmp.ne.s32.totalorder %s1670_s12, %s1398_s9  ;;  %p1403_p11 = scmp.lt.s32.totalorder %s1670_s12, %s1714_s7 }
 0x2de   : > { %p1404_p1 = scmp.lt.s32.totalorder %s1402_s13, %s1398_s9 }
 0x2df   : > { %p1400_p8 = pnand %p1399_p13, %p1736_p6 }
 0x2e0   : > { %p1405_p2 = por %p1404_p1, %p1403_p11 }
 0x2e1   : > { %p1401_p10 = pneg %p1400_p8 }
 0x2e3   : > { %p1406_p4 = pnand %p1405_p2, %p1401_p10 }
 0x2e5   : > { %1409 = shalt.err (!%p1406_p4)
}
 0x2e6   : > { %1128 = dma.vmem_to_hbm [thread:$0]  (%p1736_p6), %s914_s29, 128, %s1670_s12, %s900_s1  }
 0x2e7 PF: > { %s925_s22 = sand.u32 1, %s1444_s24   ;;  %p1737_p12 = scmp.ne.s32.totalorder %s1722_s8, 0 }
 0x2e8   : > { %p1738_p0 = scmp.ge.s32.totalorder %s1456_s27, 2  ;;  %s926_s23 = scalar_lea.sflag [#allocation4], %s925_s22 }
 0x2ea   : > { %p1145_p5 = pnand %p1738_p0, %p1737_p12 }
 0x2ec   : > { %p1146_p3 = pneg %p1145_p5 }
 0x2ee   : > { %1439 = dma.done.wait (%p1146_p3), %s926_s23, 128  }
 0x2ef   : > { %1441 = vsyncadd (%p1146_p3), %s926_s23, 4294967168  ;;  %p22_p7 = scmp.ge.s32.totalorder %s1588_s17, 4   ;;  %s1739_s24 = smov %s1448_s25 }
 0x2f0   : > { %s1740_s25 = smov %s1452_s26  ;;  %s1741_s26 = smov %s1598_s20 }
 0x2f1   : > { %s1742_s27 = smov %s1588_s17  ;;  %24 = sbr.rel (!%p22_p7) target bundleno = 10 (0xa), region = 105 }
 0x2f6   :  { %931 = vsyncpa [#allocation3], 1 }
 0x2f7   :  { %933 = vsyncpa [#allocation3 + $0x1], 1 }
 0x2f8   :  { %934 = vsyncpa [#allocation6], 1 }
 0x2f9   :  { %935 = vsyncpa [#allocation9], 1 }
 0x2fa   :  { %936 = vsyncpa [#allocation4], 1 }
 0x2fb   :  { %938 = vsyncpa [#allocation4 + $0x1], 1 }

</bundles_post_ra>
